<compile_context>
chip_gen: v7x
topology: tpu7x:2x2x1
jax: 0.10.0
libtpu: 0.0.40
codegen_flags: <defaults>
</compile_context>

<pallas_src>
import functools
import math

import jax
import jax.numpy as jnp
from jax.experimental import pallas as pl
from jax.experimental.pallas import tpu as pltpu

_LANE = 128
_BF16_SUBLANE = 16  # bf16 packs 16 rows per vreg sublane group


def _round_up(x, m):
    return ((x + m - 1) // m) * m


def _cdiv(a, b):
    return (a + b - 1) // b


# ---------------------------------------------------------------------------
# Hardware-aware helpers
# ---------------------------------------------------------------------------
def _physical_vmem_bytes():
    try:
        return int(pltpu.get_tpu_info().vmem_capacity_bytes)
    except Exception:
        return 64 << 20  # conservative (v7x per-TC size)


def _default_epilogue_dtype():
    """bf16 epilogue on v6e/v7x (bf16 VPU/EUP); f32 on v5e and older."""
    try:
        kind = jax.devices()[0].device_kind.lower()
    except Exception:
        kind = ""
    for old in ("v2", "v3", "v4", "v5"):
        if old in kind:
            return jnp.float32
    return jnp.bfloat16


@functools.lru_cache(maxsize=1)
def _single_buffer_weights_supported():
    """Probe (AOT compile, no execution) whether pipeline_mode=pl.Buffered(1)
    is accepted for a constant-index BlockSpec on this backend."""
    try:
        def k(x_ref, w_ref, o_ref):
            o_ref[...] = jnp.dot(x_ref[...], w_ref[...],
                                 preferred_element_type=jnp.float32)

        f = pl.pallas_call(
            k,
            out_shape=jax.ShapeDtypeStruct((16, 128), jnp.float32),
            grid_spec=pltpu.PrefetchScalarGridSpec(
                num_scalar_prefetch=0,
                grid=(1,),
                in_specs=[
                    pl.BlockSpec((16, 128), lambda i: (0, 0)),
                    pl.BlockSpec((128, 128), lambda i: (0, 0),
                                 pipeline_mode=pl.Buffered(1)),
                ],
                out_specs=pl.BlockSpec((16, 128), lambda i: (0, 0)),
            ),
        )
        jax.jit(f).lower(
            jax.ShapeDtypeStruct((16, 128), jnp.bfloat16),
            jax.ShapeDtypeStruct((128, 128), jnp.bfloat16),
        ).compile()
        return True
    except Exception:
        return False


# ---------------------------------------------------------------------------
# Fused MLP kernel:  h = x ; for each layer l: h = act(h @ W_l + b_l)
# ---------------------------------------------------------------------------
def _mlp_kernel(x_ref, *refs, num_layers, activation, compute_dtype):
    # refs = (w0, b0, w1, b1, ..., w_{L-1}, b_{L-1}, o_ref)
    o_ref = refs[-1]
    h = x_ref[...]  # already compute_dtype (bf16) -- streamed as-is, no cast
    for layer in range(num_layers):
        w_ref = refs[2 * layer]
        b_ref = refs[2 * layer + 1]
        # MXU matmul, f32 accumulation.
        acc = jnp.dot(h, w_ref[...], preferred_element_type=jnp.float32)
        if layer < num_layers - 1:
            # Hidden-layer epilogue in the bias dtype (bf16 on v6e/v7x, f32 on v5e).
            y = acc.astype(b_ref.dtype) + b_ref[...]
            if activation == "relu":
                y = jnp.maximum(y, 0)
            elif activation == "sigmoid":
                y = jax.nn.sigmoid(y)
            elif activation == "tanh":
                y = jnp.tanh(y)
            else:
                raise ValueError(f"Unknown activation function: {activation}")
            h = y.astype(compute_dtype)  # re-quantize for the next MXU matmul
        else:
            # Final layer: bias add in f32, store in the output dtype.
            o_ref[...] = (acc + b_ref[...].astype(jnp.float32)).astype(o_ref.dtype)


# ---------------------------------------------------------------------------
# Parameter construction (mirrors DNN.__init__ layer-size logic exactly,
# including its `hidden_sizes[i - 1]` indexing quirk)
# ---------------------------------------------------------------------------
def build_dnn_params(key, input_size, hidden_sizes, num_classes):
    """Raw PyTorch-layout params: list of (W (out,in) f32, b (out,) f32)."""
    dims = []
    if len(hidden_sizes) == 0:
        dims.append((input_size, num_classes))
    else:
        dims.append((input_size, hidden_sizes[0]))
        for i in range(len(hidden_sizes) - 1):
            # NOTE: replicates the original module's `hidden_sizes[i - 1]`
            dims.append((hidden_sizes[i - 1], hidden_sizes[i]))
        dims.append((hidden_sizes[-1], num_classes))

    # The quirk is only shape-consistent when consecutive layers chain
    # (e.g. all hidden sizes equal); otherwise the torch module itself would
    # fail at forward time with a shape mismatch.
    for prev, cur in zip(dims[:-1], dims[1:]):
        if prev[1] != cur[0]:
            raise ValueError(
                "DNN layer sizes do not chain (hidden_sizes[i-1] quirk): "
                f"{prev} -> {cur}. Use equal hidden sizes.")

    params = []
    for fin, fout in dims:
        key, kw, kb = jax.random.split(key, 3)
        bound = 1.0 / math.sqrt(fin)  # PyTorch default Linear init range
        w = jax.random.uniform(kw, (fout, fin), jnp.float32, -bound, bound)
        b = jax.random.uniform(kb, (fout,), jnp.float32, -bound, bound)
        params.append((w, b))
    return params


def pack_dnn_params(raw_params, compute_dtype=jnp.bfloat16, epilogue_dtype=None):
    """Pre-transpose + zero-pad weights ONCE (not per forward).

    W: (F_out, F_in) f32 -> (F_in_pad, F_out_pad) compute_dtype
    b: (F_out,)      f32 -> (1, F_out_pad) epilogue dtype (final bias stays f32)
    Feature dims padded to multiples of 128 (lane-dense operands and stores).
    Zero-padding keeps the math exact: the padded K rows of the next weight
    are zero, so padded activation columns (even sigmoid(0)=0.5) never
    contribute to real outputs.
    """
    if epilogue_dtype is None:
        epilogue_dtype = _default_epilogue_dtype()
    num_layers = len(raw_params)
    wts, bs = [], []
    for idx, (w, b) in enumerate(raw_params):
        fout, fin = w.shape
        fin_pad = _round_up(fin, _LANE)
        fout_pad = _round_up(fout, _LANE)
        wt = jnp.zeros((fin_pad, fout_pad), jnp.float32).at[:fin, :fout].set(w.T)
        bp = jnp.zeros((1, fout_pad), jnp.float32).at[0, :fout].set(b)
        b_dtype = jnp.float32 if idx == num_layers - 1 else epilogue_dtype
        wts.append(wt.astype(compute_dtype))
        bs.append(bp.astype(b_dtype))
    return wts, bs


# ---------------------------------------------------------------------------
# Forward pass: one fused pallas_call over a "parallel" batch grid
# ---------------------------------------------------------------------------
def dnn_forward(x, wts, bs, *, activation, num_classes,
                compute_dtype=jnp.bfloat16, batch_tile=512,
                out_dtype=jnp.float32):
    assert len(wts) == len(bs) and len(wts) >= 1
    num_layers = len(wts)
    B, F_in = x.shape
    fin0_pad = wts[0].shape[0]
    nout_pad = wts[-1].shape[1]

    # --- batch tiling: multiples of 16 (bf16 sublanes), big default tile ----
    batch_tile = _round_up(max(int(batch_tile), _BF16_SUBLANE), _BF16_SUBLANE)
    b_tile = min(batch_tile, _round_up(B, _BF16_SUBLANE))
    # Keep >=2 grid steps when the batch allows it so ("parallel",) can shard
    # across both TensorCores on v7x (sub-us extra overhead on single-TC gens).
    if _round_up(B, b_tile) == b_tile and B >= 2 * _BF16_SUBLANE:
        b_tile = _round_up(_cdiv(B, 2), _BF16_SUBLANE)
    b_pad = _round_up(B, b_tile)
    grid = (b_pad // b_tile,)

    # --- stream x in bf16; pad only when actually needed --------------------
    x_c = x.astype(compute_dtype)
    if b_pad != B or fin0_pad != F_in:
        x_c = jnp.pad(x_c, ((0, b_pad - B), (0, fin0_pad - F_in)))

    # --- specs ---------------------------------------------------------------
    single_buf = _single_buffer_weights_supported()
    w_spec_kwargs = {"pipeline_mode": pl.Buffered(1)} if single_buf else {}

    in_specs = [pl.BlockSpec((b_tile, fin0_pad), lambda i: (i, 0))]
    operands = [x_c]
    for w, b in zip(wts, bs):
        # VMEM-resident across the whole batch grid (constant index_map).
        in_specs.append(pl.BlockSpec(w.shape, lambda i: (0, 0), **w_spec_kwargs))
        in_specs.append(pl.BlockSpec(b.shape, lambda i: (0, 0), **w_spec_kwargs))
        operands.extend([w, b])
    out_specs = pl.BlockSpec((b_tile, nout_pad), lambda i: (i, 0))

    # --- scheduler hints ------------------------------------------------------
    flops = sum(2 * b_pad * w.shape[0] * w.shape[1] for w in wts)
    transcendentals = (b_pad * sum(w.shape[1] for w in wts[:-1])
                       if activation in ("sigmoid", "tanh") else 0)
    bytes_accessed = (
        x_c.size * x_c.dtype.itemsize
        + sum(w.size * w.dtype.itemsize for w in wts)
        + sum(b.size * b.dtype.itemsize for b in bs)
        + b_pad * nout_pad * jnp.dtype(out_dtype).itemsize)

    # --- generation-aware VMEM budget ----------------------------------------
    phys = _physical_vmem_bytes()
    cap = (phys * 3) // 4                      # headroom for internal scratch
    buf_factor = 1 if single_buf else 2
    resident = buf_factor * (sum(w.size * w.dtype.itemsize for w in wts)
                             + sum(b.size * b.dtype.itemsize for b in bs))
    streamed = 2 * (b_tile * fin0_pad * jnp.dtype(compute_dtype).itemsize
                    + b_tile * nout_pad * jnp.dtype(out_dtype).itemsize)
    max_width = max(w.shape[1] for w in wts)
    scratch = b_tile * max_width * (4 + 2 * jnp.dtype(compute_dtype).itemsize)
    needed = resident + streamed + scratch
    vmem_limit = int(min(cap, max(32 << 20, int(needed * 1.5))))
    vmem_limit = int(min(vmem_limit, cap))

    kernel = functools.partial(
        _mlp_kernel,
        num_layers=num_layers,
        activation=activation,
        compute_dtype=compute_dtype,
    )

    out_pad = pl.pallas_call(
        kernel,
        out_shape=jax.ShapeDtypeStruct((b_pad, nout_pad), out_dtype),
        grid_spec=pltpu.PrefetchScalarGridSpec(
            num_scalar_prefetch=0,
            grid=grid,
            in_specs=in_specs,
            out_specs=out_specs,
        ),
        compiler_params=pltpu.CompilerParams(
            dimension_semantics=("parallel",),
            vmem_limit_bytes=vmem_limit,
        ),
        cost_estimate=pl.CostEstimate(
            flops=flops,
            transcendentals=transcendentals,
            bytes_accessed=bytes_accessed,
        ),
    )(*operands)

    return out_pad[:B, :num_classes]


# ---------------------------------------------------------------------------
# Demo / smoke test
# ---------------------------------------------------------------------------
if __name__ == "__main__":
    # batch=8, input_size=64, hidden_sizes=[32, 32], num_classes=16
    # (equal hidden sizes so the module's indexing quirk stays shape-consistent)
    batch, input_size, hidden_sizes, num_classes = 8, 64, [32, 32], 16
    activation = "relu"
    compute_dtype = jnp.bfloat16
    epilogue_dtype = _default_epilogue_dtype()

    key = jax.random.PRNGKey(0)
    kx, kp = jax.random.split(key)
    x = jax.random.normal(kx, (batch, input_size), jnp.float32)

    raw_params = build_dnn_params(kp, input_size, hidden_sizes, num_classes)
    wts, bs = pack_dnn_params(raw_params, compute_dtype=compute_dtype,
                              epilogue_dtype=epilogue_dtype)

    fwd = jax.jit(functools.partial(
        dnn_forward,
        activation=activation,
        num_classes=num_classes,
        compute_dtype=compute_dtype,
    ))
    out = jax.block_until_ready(fwd(x, wts, bs))

    # Pure-JAX reference mirroring the kernel's dtype policy exactly
    # (bf16 matmul inputs, f32 accumulation, epilogue dtype per generation).
    h = x.astype(compute_dtype)
    ref = None
    for i, (w, b) in enumerate(raw_params):
        acc = jnp.dot(h, w.T.astype(compute_dtype),
                      preferred_element_type=jnp.float32)
        if i < len(raw_params) - 1:
            y = acc.astype(epilogue_dtype) + b.astype(epilogue_dtype)
            y = jnp.maximum(y, 0)  # relu
            h = y.astype(compute_dtype)
        else:
            ref = acc + b

    assert out.shape == (batch, num_classes)
    max_err = float(jnp.max(jnp.abs(out - ref)))
    assert jnp.allclose(out, ref, atol=2e-2, rtol=2e-2), max_err

    print("KERNEL_OK")
</pallas_src>

<mosaic_0001>
module attributes {stable_mosaic.version = 11 : i64} {
  func.func @_mlp_kernel(%arg0: i32, %arg1: memref<16x128xbf16, #tpu.memory_space<vmem>>, %arg2: memref<128x128xbf16, #tpu.memory_space<vmem>>, %arg3: memref<1x128xbf16, #tpu.memory_space<vmem>>, %arg4: memref<128x128xbf16, #tpu.memory_space<vmem>>, %arg5: memref<1x128xbf16, #tpu.memory_space<vmem>>, %arg6: memref<128x128xbf16, #tpu.memory_space<vmem>>, %arg7: memref<1x128xf32, #tpu.memory_space<vmem>>, %arg8: memref<16x128xf32, #tpu.memory_space<vmem>>) attributes {dimension_semantics = [#tpu.dimension_semantics<parallel>], iteration_bounds = array<i64: 1>, scalar_prefetch = 0 : i64, scratch_operands = 0 : i64, tpu.core_type = #tpu.core_type<tc>, window_params = [{transform_indices = @transform_0, window_bounds = array<i64: 16, 128>}, {pipeline_mode = #tpu.pipeline_mode<synchronous>, transform_indices = @transform_1, window_bounds = array<i64: 128, 128>}, {pipeline_mode = #tpu.pipeline_mode<synchronous>, transform_indices = @transform_2, window_bounds = array<i64: 1, 128>}, {pipeline_mode = #tpu.pipeline_mode<synchronous>, transform_indices = @transform_3, window_bounds = array<i64: 128, 128>}, {pipeline_mode = #tpu.pipeline_mode<synchronous>, transform_indices = @transform_4, window_bounds = array<i64: 1, 128>}, {pipeline_mode = #tpu.pipeline_mode<synchronous>, transform_indices = @transform_5, window_bounds = array<i64: 128, 128>}, {pipeline_mode = #tpu.pipeline_mode<synchronous>, transform_indices = @transform_6, window_bounds = array<i64: 1, 128>}, {transform_indices = @transform_7, window_bounds = array<i64: 16, 128>}]} {
    %c0 = arith.constant 0 : index
    %c0_0 = arith.constant 0 : index
    %0 = vector.load %arg1[%c0, %c0_0] : memref<16x128xbf16, #tpu.memory_space<vmem>>, vector<16x128xbf16>
    %c0_1 = arith.constant 0 : index
    %c0_2 = arith.constant 0 : index
    %1 = vector.load %arg2[%c0_1, %c0_2] : memref<128x128xbf16, #tpu.memory_space<vmem>>, vector<128x128xbf16>
    %cst = arith.constant dense<0.000000e+00> : vector<16x128xf32>
    %2 = tpu.matmul %0, %1, %cst {dimension_numbers = #tpu.dot_dimension_numbers<[1], [0], [0], [1], [0, 0, 1, 1], [], []>} : vector<16x128xbf16>, vector<128x128xbf16>, vector<16x128xf32> -> vector<16x128xf32>
    %3 = arith.truncf %2 : vector<16x128xf32> to vector<16x128xbf16>
    %c0_3 = arith.constant 0 : index
    %c0_4 = arith.constant 0 : index
    %4 = vector.load %arg3[%c0_3, %c0_4] : memref<1x128xbf16, #tpu.memory_space<vmem>>, vector<1x128xbf16>
    %5 = vector.broadcast %4 : vector<1x128xbf16> to vector<16x128xbf16>
    %6 = arith.addf %3, %5 : vector<16x128xbf16>
    %cst_5 = arith.constant 0.000000e+00 : bf16
    %7 = vector.broadcast %cst_5 : bf16 to vector<16x128xbf16>
    %8 = arith.maximumf %6, %7 : vector<16x128xbf16>
    %c0_6 = arith.constant 0 : index
    %c0_7 = arith.constant 0 : index
    %9 = vector.load %arg4[%c0_6, %c0_7] : memref<128x128xbf16, #tpu.memory_space<vmem>>, vector<128x128xbf16>
    %cst_8 = arith.constant dense<0.000000e+00> : vector<16x128xf32>
    %10 = tpu.matmul %8, %9, %cst_8 {dimension_numbers = #tpu.dot_dimension_numbers<[1], [0], [0], [1], [0, 0, 1, 1], [], []>} : vector<16x128xbf16>, vector<128x128xbf16>, vector<16x128xf32> -> vector<16x128xf32>
    %11 = arith.truncf %10 : vector<16x128xf32> to vector<16x128xbf16>
    %c0_9 = arith.constant 0 : index
    %c0_10 = arith.constant 0 : index
    %12 = vector.load %arg5[%c0_9, %c0_10] : memref<1x128xbf16, #tpu.memory_space<vmem>>, vector<1x128xbf16>
    %13 = vector.broadcast %12 : vector<1x128xbf16> to vector<16x128xbf16>
    %14 = arith.addf %11, %13 : vector<16x128xbf16>
    %cst_11 = arith.constant 0.000000e+00 : bf16
    %15 = vector.broadcast %cst_11 : bf16 to vector<16x128xbf16>
    %16 = arith.maximumf %14, %15 : vector<16x128xbf16>
    %c0_12 = arith.constant 0 : index
    %c0_13 = arith.constant 0 : index
    %17 = vector.load %arg6[%c0_12, %c0_13] : memref<128x128xbf16, #tpu.memory_space<vmem>>, vector<128x128xbf16>
    %cst_14 = arith.constant dense<0.000000e+00> : vector<16x128xf32>
    %18 = tpu.matmul %16, %17, %cst_14 {dimension_numbers = #tpu.dot_dimension_numbers<[1], [0], [0], [1], [0, 0, 1, 1], [], []>} : vector<16x128xbf16>, vector<128x128xbf16>, vector<16x128xf32> -> vector<16x128xf32>
    %c0_15 = arith.constant 0 : index
    %c0_16 = arith.constant 0 : index
    %19 = vector.load %arg7[%c0_15, %c0_16] : memref<1x128xf32, #tpu.memory_space<vmem>>, vector<1x128xf32>
    %20 = vector.broadcast %19 : vector<1x128xf32> to vector<16x128xf32>
    %21 = arith.addf %18, %20 : vector<16x128xf32>
    %c0_17 = arith.constant 0 : index
    %c0_18 = arith.constant 0 : index
    %22 = vector.load %arg8[%c0_17, %c0_18] : memref<16x128xf32, #tpu.memory_space<vmem>>, vector<16x128xf32>
    tpu.vector_store %arg8[%c0_17, %c0_18], %21 {strides = array<i32>} : memref<16x128xf32, #tpu.memory_space<vmem>>, vector<16x128xf32>,
    return
  }
  func.func @transform_0(%arg0: i32) -> (i32, i32) {
    %c0_i32 = arith.constant 0 : i32
    %c0_i32_0 = arith.constant 0 : i32
    return %arg0, %c0_i32 : i32, i32
  }
  func.func @transform_1(%arg0: i32) -> (i32, i32) {
    %c0_i32 = arith.constant 0 : i32
    %c0_i32_0 = arith.constant 0 : i32
    %c0_i32_1 = arith.constant 0 : i32
    return %c0_i32, %c0_i32_0 : i32, i32
  }
  func.func @transform_2(%arg0: i32) -> (i32, i32) {
    %c0_i32 = arith.constant 0 : i32
    %c0_i32_0 = arith.constant 0 : i32
    %c0_i32_1 = arith.constant 0 : i32
    return %c0_i32, %c0_i32_0 : i32, i32
  }
  func.func @transform_3(%arg0: i32) -> (i32, i32) {
    %c0_i32 = arith.constant 0 : i32
    %c0_i32_0 = arith.constant 0 : i32
    %c0_i32_1 = arith.constant 0 : i32
    return %c0_i32, %c0_i32_0 : i32, i32
  }
  func.func @transform_4(%arg0: i32) -> (i32, i32) {
    %c0_i32 = arith.constant 0 : i32
    %c0_i32_0 = arith.constant 0 : i32
    %c0_i32_1 = arith.constant 0 : i32
    return %c0_i32, %c0_i32_0 : i32, i32
  }
  func.func @transform_5(%arg0: i32) -> (i32, i32) {
    %c0_i32 = arith.constant 0 : i32
    %c0_i32_0 = arith.constant 0 : i32
    %c0_i32_1 = arith.constant 0 : i32
    return %c0_i32, %c0_i32_0 : i32, i32
  }
  func.func @transform_6(%arg0: i32) -> (i32, i32) {
    %c0_i32 = arith.constant 0 : i32
    %c0_i32_0 = arith.constant 0 : i32
    %c0_i32_1 = arith.constant 0 : i32
    return %c0_i32, %c0_i32_0 : i32, i32
  }
  func.func @transform_7(%arg0: i32) -> (i32, i32) {
    %c0_i32 = arith.constant 0 : i32
    %c0_i32_0 = arith.constant 0 : i32
    return %arg0, %c0_i32 : i32, i32
  }
}

</mosaic_0001>

<bundles_post_ra>
// kernel: dnn_forward.1
= control target key start
LH: loop header
LB: loop body
LE: loop exit
PB: predicated region body
PF: predicated region fallthrough
CT: control target
= control target key end

     0   :  { %12 = vsyncpa [#allocation3], 0  ;;  %s792_s0 = inlined_call_operand.vmem [shape: bf16[16,128], index: 0, kind: input, shape index: {}]   ;;  %s793_s1 = inlined_call_operand.hbm [shape: bf16[128,128], index: 1, kind: input, shape index: {}]   ;;  %s794_s2 = inlined_call_operand.vmem [shape: bf16[1,128], index: 2, kind: input, shape index: {}]   ;;  %s795_s3 = inlined_call_operand.hbm [shape: bf16[128,128], index: 3, kind: input, shape index: {}]   ;;  %s796_s4 = inlined_call_operand.vmem [shape: bf16[1,128], index: 4, kind: input, shape index: {}]   ;;  %s797_s5 = inlined_call_operand.hbm [shape: bf16[128,128], index: 5, kind: input, shape index: {}]   ;;  %s798_s6 = inlined_call_operand.vmem [shape: f32[1,128], index: 6, kind: input, shape index: {}]   ;;  %s799_s7 = inlined_call_operand.vmem [shape: f32[16,128], index: 7, kind: output, shape index: {}]  }
   0x1   :  { %13 = vsyncpa [#allocation5], 0  ;;  %s644_s24 = smov [#allocation4]   ;;  %s645_s26 = smov [#allocation2]  }
   0x2   :  { %s35_s25 = sshll.u32 %s644_s24, 4  ;;  %s21_s27 = sshll.u32 %s645_s26, 4  ;;  %s36_s25 = int_to_ptr.vmem [resolvable:$true] %s35_s25  ;;  %s692_s27 = int_to_ptr.vmem [resolvable:$true] %s21_s27 }
   0x3   :  { %s574_s30 = scalar_lea.hbm %s795_s3, 1024 }
   0x4   :  { %p575_p0 = scmp.ne.s32.totalorder %s795_s3, %s574_s30  ;;  %p578_p1 = scmp.lt.u32.totalorder %s574_s30, %s795_s3 }
   0x6   :  { %p580_p2 = pnand %p578_p1, %p575_p0 }
   0x8   :  { %583 = shalt.err (!%p580_p2)
}
   0x9   :  { %s584_s12 = scalar_lea.vmem %s36_s25, 1024  ;;  %p589_p4 = scmp.lt.s32.totalorder %s36_s25, %s36_s25 }
   0xa   :  { %p585_p3 = scmp.ne.s32.totalorder %s36_s25, %s584_s12  ;;  %p590_p5 = scmp.lt.s32.totalorder %s584_s12, %s584_s12 }
   0xc   :  { %p591_p6 = por %p590_p5, %p589_p4 }
   0xe   :  { %p592_p7 = pnand %p591_p6, %p585_p3 }
  0x10   :  { %595 = shalt.err (!%p592_p7)
}
  0x11   :  { %s646_s13 = smov 64   ;;  %s647_s14 = smov 4  }
  0x12   :  { %41 = dma.hbm_to_vmem [thread:$0]  %s795_s3, 1024, %s36_s25, [#allocation5], %s646_s13, %s646_s13, %s647_s14  }
  0x13   :  { %s596_s19 = scalar_lea.hbm %s793_s1, 1024 }
  0x14   :  { %p597_p8 = scmp.ne.s32.totalorder %s793_s1, %s596_s19  ;;  %p600_p9 = scmp.lt.u32.totalorder %s596_s19, %s793_s1 }
  0x16   :  { %p602_p10 = pnand %p600_p9, %p597_p8 }
  0x18   :  { %605 = shalt.err (!%p602_p10)
}
  0x19   :  { %s606_s24 = scalar_lea.vmem %s692_s27, 1024  ;;  %p611_p12 = scmp.lt.s32.totalorder %s692_s27, %s692_s27 }
  0x1a   :  { %p607_p11 = scmp.ne.s32.totalorder %s692_s27, %s606_s24  ;;  %p612_p13 = scmp.lt.s32.totalorder %s606_s24, %s606_s24 }
  0x1c   :  { %p613_p0 = por %p612_p13, %p611_p12 }
  0x1e   :  { %p614_p1 = pnand %p613_p0, %p607_p11 }
  0x20   :  { %617 = shalt.err (!%p614_p1)
}
  0x21   :  { %27 = dma.hbm_to_vmem [thread:$0]  %s793_s1, 1024, %s692_s27, [#allocation3], %s646_s13, %s646_s13, %s647_s14  }
  0x22   :  { %s648_s26 = smov [#allocation6]   ;;  %s618_s8 = scalar_lea.hbm %s797_s5, 1024 }
  0x23   :  { %s49_s28 = sshll.u32 %s648_s26, 4  ;;  %p619_p2 = scmp.ne.s32.totalorder %s797_s5, %s618_s8  ;;  %s50_s28 = int_to_ptr.vmem [resolvable:$true] %s49_s28 }
  0x24   :  { %p622_p3 = scmp.lt.u32.totalorder %s618_s8, %s797_s5 }
  0x26   :  { %p624_p4 = pnand %p622_p3, %p619_p2 }
  0x28   :  { %627 = shalt.err (!%p624_p4)
}
  0x29   :  { %s628_s15 = scalar_lea.vmem %s50_s28, 1024  ;;  %p633_p6 = scmp.lt.s32.totalorder %s50_s28, %s50_s28 }
  0x2a   :  { %p629_p5 = scmp.ne.s32.totalorder %s50_s28, %s628_s15  ;;  %p634_p7 = scmp.lt.s32.totalorder %s628_s15, %s628_s15 }
  0x2c   :  { %p635_p8 = por %p634_p7, %p633_p6 }
  0x2e   :  { %p636_p9 = pnand %p635_p8, %p629_p5 }
  0x30   :  { %639 = shalt.err (!%p636_p9)
}
  0x31   :  { %55 = dma.hbm_to_vmem [thread:$0]  %s797_s5, 1024, %s50_s28, [#allocation5], %s646_s13, %s646_s13, %s647_s14  }
  0x32   :  { %640 = dma.done.wait [#allocation3], 1024  }
  0x33   :  { %641 = vsyncadd [#allocation3], 4294966272 }
  0x34   :  { %642 = dma.done.wait [#allocation5], 2048  }
  0x35   :  { %643 = vsyncadd [#allocation5], 4294965248  ;;  %v649_v0 = vmov 0.0   ;;  %vm650_vm0 = vmmov 0   ;;  %v549_v1 = vld [vmem:[#allocation2] sm:$0xff]   ;;  %v550_v2 = vld [vmem:[#allocation2 + $0x8] sm:$0xff]   ;;  %v186_v24 = vlaneseq }
  0x36   :  { %481 = vmatprep.subr.bf16.mxu0 %v649_v0  ;;  %497 = vmatprep.mubr.msk.bf16.mxu0 %vm650_vm0, %v649_v0  ;;  %v551_v3 = vld [vmem:[#allocation2 + $0x10] sm:$0xff]   ;;  %v558_v4 = vld [vmem:[#allocation4] sm:$0xff]   ;;  %v552_v5 = vld [vmem:[#allocation2 + $0x18] sm:$0xff]   ;;  %v651_v36 = vmov 0  }
  0x37   :  { %501 = vmatprep.subr.bf16.mxu1 %v649_v0  ;;  %517 = vmatprep.mubr.msk.bf16.mxu1 %vm650_vm0, %v649_v0  ;;  %v559_v6 = vld [vmem:[#allocation4 + $0x8] sm:$0xff]   ;;  %v553_v7 = vld [vmem:[#allocation2 + $0x20] sm:$0xff]   ;;  %v560_v8 = vld [vmem:[#allocation4 + $0x10] sm:$0xff]   ;;  %v187_v25 = vshrl.u32 %v186_v24, 7 }
  0x38   :  { %482 = vmatpush3.bf16.msra.mxu0 %v549_v1  ;;  %502 = vmatpush3.bf16.msra.mxu1 %v558_v4  ;;  %v554_v9 = vld [vmem:[#allocation2 + $0x28] sm:$0xff]   ;;  %v561_v10 = vld [vmem:[#allocation4 + $0x18] sm:$0xff]   ;;  %v555_v11 = vld [vmem:[#allocation2 + $0x30] sm:$0xff]  }
  0x39   :  { %483 = vmatprep.subr.bf16.mxu0 %v649_v0  ;;  %503 = vmatprep.subr.bf16.mxu1 %v649_v0  ;;  %v562_v12 = vld [vmem:[#allocation4 + $0x20] sm:$0xff]   ;;  %v556_v13 = vld [vmem:[#allocation2 + $0x38] sm:$0xff]   ;;  %v563_v14 = vld [vmem:[#allocation4 + $0x28] sm:$0xff]   ;;  %v188_v28 = vsub.s32 0, %v187_v25 }
  0x3a   :  { %v557_v15 = vld [vmem:[%s792_s0] sm:$0xff]   ;;  %v564_v16 = vld [vmem:[#allocation4 + $0x30] sm:$0xff]   ;;  %v565_v17 = vld [vmem:[#allocation4 + $0x38] sm:$0xff]  }
  0x3b   :  { %v566_v18 = vld [vmem:[#allocation6] sm:$0xff]   ;;  %v567_v19 = vld [vmem:[#allocation6 + $0x8] sm:$0xff]   ;;  %v568_v20 = vld [vmem:[#allocation6 + $0x10] sm:$0xff]  }
  0x3c   :  { %484 = vmatpush3.bf16.msra.mxu0 %v550_v2  ;;  %504 = vmatpush3.bf16.msra.mxu1 %v559_v6  ;;  %v569_v21 = vld [vmem:[#allocation6 + $0x18] sm:$0xff]   ;;  %v570_v22 = vld [vmem:[#allocation6 + $0x20] sm:$0xff]   ;;  %v571_v23 = vld [vmem:[#allocation6 + $0x28] sm:$0xff]  }
  0x3d   :  { %485 = vmatprep.subr.bf16.mxu0 %v649_v0  ;;  %505 = vmatprep.subr.bf16.mxu1 %v649_v0  ;;  %v182_v26 = vld [vmem:[%s794_s2] sm:$0x1]  ;;  %v572_v38 = vld [vmem:[#allocation6 + $0x30] sm:$0xff]   ;;  %v573_v39 = vld [vmem:[#allocation6 + $0x38] sm:$0xff]  }
  0x3e   :  { %v184_v27 = vpack.i.b16 %v182_v26, %v182_v26  ;;  %v298_v40 = vld [vmem:[%s796_s4] sm:$0x1] }
  0x3f   :  { %v300_v41 = vpack.i.b16 %v298_v40, %v298_v40  ;;  %v445_v50 = vld [vmem:[%s798_s6] ss:$0 sm:$0xff] }
  0x40   :  { %486 = vmatpush3.bf16.msra.mxu0 %v551_v3  ;;  %506 = vmatpush3.bf16.msra.mxu1 %v560_v8  ;;  %v189_v31 = vrot.slane %v184_v27, %v188_v28 }
  0x41   :  { %487 = vmatprep.subr.bf16.mxu0 %v649_v0  ;;  %507 = vmatprep.subr.bf16.mxu1 %v649_v0  ;;  %v305_v44 = vrot.slane %v300_v41, %v188_v28 }
  0x44   :  { %488 = vmatpush3.bf16.msra.mxu0 %v552_v5  ;;  %508 = vmatpush3.bf16.msra.mxu1 %v561_v10 }
  0x45   :  { %489 = vmatprep.subr.bf16.mxu0 %v649_v0  ;;  %509 = vmatprep.subr.bf16.mxu1 %v649_v0 }
  0x48   :  { %490 = vmatpush3.bf16.msra.mxu0 %v553_v7  ;;  %510 = vmatpush3.bf16.msra.mxu1 %v562_v12 }
  0x49   :  { %491 = vmatprep.subr.bf16.mxu0 %v649_v0  ;;  %511 = vmatprep.subr.bf16.mxu1 %v649_v0 }
  0x4c   :  { %492 = vmatpush3.bf16.msra.mxu0 %v554_v9  ;;  %512 = vmatpush3.bf16.msra.mxu1 %v563_v14 }
  0x4d   :  { %493 = vmatprep.subr.bf16.mxu0 %v649_v0  ;;  %513 = vmatprep.subr.bf16.mxu1 %v649_v0 }
  0x50   :  { %494 = vmatpush3.bf16.msra.mxu0 %v555_v11  ;;  %514 = vmatpush3.bf16.msra.mxu1 %v564_v16 }
  0x51   :  { %495 = vmatprep.subr.bf16.mxu0 %v649_v0  ;;  %515 = vmatprep.subr.bf16.mxu1 %v649_v0 }
  0x54   :  { %496 = vmatpush3.bf16.msra.mxu0 %v556_v13  ;;  %516 = vmatpush3.bf16.msra.mxu1 %v565_v17 }
  0x55   :  { %521 = vmatprep.subr.bf16.mxu0 %v649_v0 }
  0x57   :  { %498 = vmatmul.mubr.bf16.vlgmr.msra.gmra.mrb[0].mxu0 %v557_v15 }
  0x58   :  { %537 = vmatprep.mubr.msk.bf16.mxu0 %vm650_vm0, %v649_v0  ;;  %522 = vmatpush3.bf16.msra.mxu0 %v566_v18 }
  0x59   :  { %523 = vmatprep.subr.bf16.mxu0 %v649_v0 }
  0x5c   :  { %524 = vmatpush3.bf16.msra.mxu0 %v567_v19 }
  0x5d   :  { %525 = vmatprep.subr.bf16.mxu0 %v649_v0 }
  0x60   :  { %526 = vmatpush3.bf16.msra.mxu0 %v568_v20 }
  0x61   :  { %527 = vmatprep.subr.bf16.mxu0 %v649_v0 }
  0x64   :  { %528 = vmatpush3.bf16.msra.mxu0 %v569_v21 }
  0x65   :  { %529 = vmatprep.subr.bf16.mxu0 %v649_v0 }
  0x68   :  { %530 = vmatpush3.bf16.msra.mxu0 %v570_v22 }
  0x69   :  { %531 = vmatprep.subr.bf16.mxu0 %v649_v0 }
  0x6c   :  { %532 = vmatpush3.bf16.msra.mxu0 %v571_v23 }
  0x6d   :  { %533 = vmatprep.subr.bf16.mxu0 %v649_v0 }
  0x70   :  { %534 = vmatpush3.bf16.msra.mxu0 %v572_v38 }
  0x71   :  { %535 = vmatprep.subr.bf16.mxu0 %v649_v0 }
  0x74   :  { %536 = vmatpush3.bf16.msra.mxu0 %v573_v39 }
 0x12a   :  { %v174_v29 = vpop.f32.mrb[0].mxu0 }
 0x12b   :  { %v499_v30 = vpop.f32.mrb[1].mxu0 }
 0x12c   :  { %v177_v32 = vpop.f32.mrb[2].mxu0 }
 0x12d   :  { %v181_v33 = vpack.c.bf16 %v177_v32, %v174_v29  ;;  %v500_v34 = vpop.f32.mrb[3].mxu0 }
 0x12f   :  { %v190_v35 = vadd.bf16 %v189_v31, %v181_v33 }
 0x131   :  { %v191_v37 = vmax.bf16 %v651_v36, %v190_v35 }
 0x133   :  { %518 = vmatmul.mubr.bf16.vlgmr.msra.gmra.mrb[0].mxu1 %v191_v37 }
 0x206   :  { %v290_v42 = vpop.f32.mrb[0].mxu1 }
 0x207   :  { %v519_v43 = vpop.f32.mrb[1].mxu1 }
 0x208   :  { %v293_v45 = vpop.f32.mrb[2].mxu1 }
 0x209   :  { %v297_v46 = vpack.c.bf16 %v293_v45, %v290_v42  ;;  %v520_v47 = vpop.f32.mrb[3].mxu1 }
 0x20b   :  { %v306_v48 = vadd.bf16 %v305_v44, %v297_v46 }
 0x20d   :  { %v307_v49 = vmax.bf16 %v651_v36, %v306_v48 }
 0x20f   :  { %538 = vmatmul.mubr.bf16.vlgmr.msra.gmra.mrb[4].mxu0 %v307_v49 }
 0x2e2   :  { %v413_v51 = vpop.f32.mrb[4].mxu0 }
 0x2e3   :  { %v414_v52 = vadd.f32 %v445_v50, %v413_v51  ;;  %v539_v53 = vpop.f32.mrb[5].mxu0 }
 0x2e4   :  { %v416_v54 = vpop.f32.mrb[6].mxu0 }
 0x2e5   :  { %420 = vst [vmem:[%s799_s7] sm:$0xff] %v414_v52  ;;  %v417_v55 = vadd.f32 %v445_v50, %v416_v54  ;;  %v540_v56 = vpop.f32.mrb[7].mxu0 }
 0x2e7   :  { %421 = vst [vmem:[%s799_s7 + $0x8] sm:$0xff] %v417_v55 }
 0x2e8   :  { %426 = vsyncpa [#allocation3], 1 }
 0x2e9   :  { %427 = vsyncpa [#allocation5], 1 }

</bundles_post_ra>
